<compile_context>
chip_gen: v7x
topology: tpu7x:2x2x1
jax: 0.10.0
libtpu: 0.0.40
codegen_flags: <defaults>
</compile_context>

<pallas_src>
import math

import jax
import jax.numpy as jnp
from jax.experimental import pallas as pl
from jax.experimental.pallas import tpu as pltpu


def _sig_linear3_kernel(x_ref, neg_a_ref, b_ref, o_ref):
    # x_ref/o_ref: (tile_rows, cols); neg_a_ref/b_ref: (1, cols) f32, broadcast
    # over sublanes.  sigmoid(-a - b*x) == sigmoid(neg_a - b*x), neg_a = -a.
    x = x_ref[...].astype(jnp.float32)
    o_ref[...] = jax.nn.sigmoid(neg_a_ref[...] - b_ref[...] * x).astype(o_ref.dtype)


def _round_up(v, m):
    return -(-v // m) * m


def sig_linear3(x, a, b, *, target_tile_bytes=4 << 20,
                vmem_limit_bytes=40 * 1024 * 1024):
    """sigmoid(-a - b * x); a, b of shape (in_dim,), x of shape (..., in_dim)."""
    in_dim = a.shape[0]
    assert x.shape[-1] == in_dim, "last dim of x must equal in_dim"
    orig_shape = x.shape
    out_dtype = jnp.result_type(x.dtype, a.dtype, b.dtype)

    x2 = x.reshape(-1, in_dim)
    batch = x2.shape[0]
    if batch == 0:
        return jnp.zeros(orig_shape, out_dtype)

    # Fold `group` consecutive batch rows into one lane-dense row so the last
    # dim (cols = group * in_dim) is a multiple of 128 lanes.
    group = 128 // math.gcd(in_dim, 128)
    cols = group * in_dim

    # Pad only to the reshape requirement (< group extra rows); the grid's last
    # block is allowed to be partial, so no tile-multiple padding is needed.
    pad_rows = (-batch) % group
    if pad_rows:
        x2 = jnp.pad(x2, ((0, pad_rows), (0, 0)))
    padded_batch = batch + pad_rows
    rows = padded_batch // group
    x_lane = x2.reshape(rows, cols)          # free, row-major reshape

    # Sublane packing for the narrowest dtype on the hot path (8/16/32).
    itemsize_in = jnp.dtype(x.dtype).itemsize
    itemsize_out = jnp.dtype(out_dtype).itemsize
    pack = 32 // min(itemsize_in, itemsize_out, 4)

    bytes_per_row = cols * max(itemsize_in, itemsize_out)
    target = max(int(target_tile_bytes), 512 * 1024)   # floor: avoid overhead-bound tiles

    if rows <= pack:
        # Single exact block (block rows == array rows, always legal).
        tile_rows = rows
    else:
        tile_rows = max(pack, target // bytes_per_row // pack * pack)
        tile_rows = min(tile_rows, _round_up(rows, pack))
        # Keep >= 2 grid steps so both v7x TensorCores get work.
        tile_rows = min(tile_rows, _round_up(pl.cdiv(rows, 2), pack))
    n_tiles = pl.cdiv(rows, tile_rows)

    # Parameter prep hoisted out of the kernel (O(cols) work, f32 for parity
    # with PyTorch's promotion).  Kept as (1, cols) resident blocks; the
    # sublane broadcast in-kernel is negligible since the kernel is DMA-bound.
    neg_a_t = jnp.tile(jnp.negative(a).astype(jnp.float32), group).reshape(1, cols)
    b_t = jnp.tile(b.astype(jnp.float32), group).reshape(1, cols)

    out_lane = pl.pallas_call(
        _sig_linear3_kernel,
        out_shape=jax.ShapeDtypeStruct((rows, cols), out_dtype),
        grid=(n_tiles,),
        in_specs=[
            pl.BlockSpec((tile_rows, cols), lambda i: (i, 0)),
            pl.BlockSpec((1, cols), lambda i: (0, 0)),   # -a stays resident
            pl.BlockSpec((1, cols), lambda i: (0, 0)),   # b stays resident
        ],
        out_specs=pl.BlockSpec((tile_rows, cols), lambda i: (i, 0)),
        compiler_params=pltpu.CompilerParams(
            dimension_semantics=("parallel",),
            vmem_limit_bytes=vmem_limit_bytes,
        ),
    )(x_lane, neg_a_t, b_t)

    out = out_lane.reshape(padded_batch, in_dim)
    if pad_rows:
        out = out[:batch]
    return out.reshape(orig_shape)


if __name__ == "__main__":
    key = jax.random.PRNGKey(0)
    k_x, k_a, k_b, k_x2, k_x3 = jax.random.split(key, 5)

    in_dim = 8          # matches the module default

    a = jax.random.normal(k_a, (in_dim,), dtype=jnp.float32)
    b = jax.random.normal(k_b, (in_dim,), dtype=jnp.float32)

    def ref_fn(xx):
        return jax.nn.sigmoid(-a - b * xx)

    # 1) Small shape consistent with the module: batch folds into exactly one
    #    lane-dense tile, zero padding / zero extra HBM traffic.
    x = jax.random.normal(k_x, (2, 64, in_dim), dtype=jnp.float32)
    out = sig_linear3(x, a, b)
    jax.block_until_ready(out)
    assert out.shape == x.shape
    assert jnp.allclose(out, ref_fn(x), atol=1e-6, rtol=1e-6)

    # 2) Larger, group-unaligned batch: exercises the tiny reshape-only pad,
    #    the partial last grid block, and the >=2-tile megacore split.
    xb = jax.random.normal(k_x2, (20005, in_dim), dtype=jnp.float32)
    outb = sig_linear3(xb, a, b)
    jax.block_until_ready(outb)
    assert outb.shape == xb.shape
    assert jnp.allclose(outb, ref_fn(xb), atol=1e-6, rtol=1e-6)

    # 3) Tiny unaligned batch (rows < sublane pack): single exact-block path.
    xc = jax.random.normal(k_x3, (20, in_dim), dtype=jnp.float32)
    outc = sig_linear3(xc, a, b)
    jax.block_until_ready(outc)
    assert outc.shape == xc.shape
    assert jnp.allclose(outc, ref_fn(xc), atol=1e-6, rtol=1e-6)

    print("KERNEL_OK")
</pallas_src>

<mosaic_0001>
module attributes {stable_mosaic.version = 11 : i64} {
  func.func @_sig_linear3_kernel(%arg0: i32, %arg1: memref<8x128xf32, #tpu.memory_space<vmem>>, %arg2: memref<1x128xf32, #tpu.memory_space<vmem>>, %arg3: memref<1x128xf32, #tpu.memory_space<vmem>>, %arg4: memref<8x128xf32, #tpu.memory_space<vmem>>) attributes {dimension_semantics = [#tpu.dimension_semantics<parallel>], iteration_bounds = array<i64: 1>, scalar_prefetch = 0 : i64, scratch_operands = 0 : i64, tpu.core_type = #tpu.core_type<tc>, window_params = [{transform_indices = @transform_0, window_bounds = array<i64: 8, 128>}, {pipeline_mode = #tpu.pipeline_mode<synchronous>, transform_indices = @transform_1, window_bounds = array<i64: 1, 128>}, {pipeline_mode = #tpu.pipeline_mode<synchronous>, transform_indices = @transform_2, window_bounds = array<i64: 1, 128>}, {transform_indices = @transform_3, window_bounds = array<i64: 8, 128>}]} {
    %c0 = arith.constant 0 : index
    %c0_0 = arith.constant 0 : index
    %0 = vector.load %arg1[%c0, %c0_0] : memref<8x128xf32, #tpu.memory_space<vmem>>, vector<8x128xf32>
    %c0_1 = arith.constant 0 : index
    %c0_2 = arith.constant 0 : index
    %1 = vector.load %arg2[%c0_1, %c0_2] : memref<1x128xf32, #tpu.memory_space<vmem>>, vector<1x128xf32>
    %c0_3 = arith.constant 0 : index
    %c0_4 = arith.constant 0 : index
    %2 = vector.load %arg3[%c0_3, %c0_4] : memref<1x128xf32, #tpu.memory_space<vmem>>, vector<1x128xf32>
    %3 = vector.broadcast %2 : vector<1x128xf32> to vector<8x128xf32>
    %4 = arith.mulf %3, %0 : vector<8x128xf32>
    %5 = vector.broadcast %1 : vector<1x128xf32> to vector<8x128xf32>
    %6 = arith.subf %5, %4 : vector<8x128xf32>
    %7 = arith.negf %6 : vector<8x128xf32>
    %8 = math.exp %7 : vector<8x128xf32>
    %cst = arith.constant 1.000000e+00 : f32
    %9 = vector.broadcast %cst : f32 to vector<8x128xf32>
    %10 = arith.addf %9, %8 : vector<8x128xf32>
    %11 = arith.divf %9, %10 : vector<8x128xf32>
    %c0_5 = arith.constant 0 : index
    %c0_6 = arith.constant 0 : index
    %12 = vector.load %arg4[%c0_5, %c0_6] : memref<8x128xf32, #tpu.memory_space<vmem>>, vector<8x128xf32>
    tpu.vector_store %arg4[%c0_5, %c0_6], %11 {strides = array<i32>} : memref<8x128xf32, #tpu.memory_space<vmem>>, vector<8x128xf32>,
    return
  }
  func.func @transform_0(%arg0: i32) -> (i32, i32) {
    %c0_i32 = arith.constant 0 : i32
    %c0_i32_0 = arith.constant 0 : i32
    return %arg0, %c0_i32 : i32, i32
  }
  func.func @transform_1(%arg0: i32) -> (i32, i32) {
    %c0_i32 = arith.constant 0 : i32
    %c0_i32_0 = arith.constant 0 : i32
    %c0_i32_1 = arith.constant 0 : i32
    return %c0_i32, %c0_i32_0 : i32, i32
  }
  func.func @transform_2(%arg0: i32) -> (i32, i32) {
    %c0_i32 = arith.constant 0 : i32
    %c0_i32_0 = arith.constant 0 : i32
    %c0_i32_1 = arith.constant 0 : i32
    return %c0_i32, %c0_i32_0 : i32, i32
  }
  func.func @transform_3(%arg0: i32) -> (i32, i32) {
    %c0_i32 = arith.constant 0 : i32
    %c0_i32_0 = arith.constant 0 : i32
    return %arg0, %c0_i32 : i32, i32
  }
}

</mosaic_0001>

<bundles_post_ra>
// kernel: tpu_custom_call.1
= control target key start
LH: loop header
LB: loop body
LE: loop exit
PB: predicated region body
PF: predicated region fallthrough
CT: control target
= control target key end

     0   :  { %8 = vsyncpa [#allocation3], 0  ;;  %s175_s0 = inlined_call_operand.hbm [shape: f32[8,128], index: 0, kind: input, shape index: {}]   ;;  %s176_s1 = inlined_call_operand.vmem [shape: f32[1,128], index: 1, kind: input, shape index: {}]   ;;  %s177_s2 = inlined_call_operand.vmem [shape: f32[1,128], index: 2, kind: input, shape index: {}]   ;;  %s178_s3 = inlined_call_operand.hbm [shape: f32[8,128], index: 3, kind: output, shape index: {}]  }
   0x1   :  { %9 = vsyncpa [#allocation4], 0  ;;  %s123_s12 = smov [#allocation2]   ;;  %s75_s16 = scalar_lea.hbm %s175_s0, 128 }
   0x2   :  { %s16_s13 = sshll.u32 %s123_s12, 4  ;;  %p76_p0 = scmp.ne.s32.totalorder %s175_s0, %s75_s16  ;;  %s17_s13 = int_to_ptr.vmem [resolvable:$true] %s16_s13 }
   0x3   :  { %p79_p1 = scmp.lt.u32.totalorder %s75_s16, %s175_s0 }
   0x5   :  { %p81_p2 = pnand %p79_p1, %p76_p0 }
   0x7   :  { %84 = shalt.err (!%p81_p2)
}
   0x8   :  { %s85_s21 = scalar_lea.vmem %s17_s13, 128  ;;  %p90_p4 = scmp.lt.s32.totalorder %s17_s13, %s17_s13 }
   0x9   :  { %p86_p3 = scmp.ne.s32.totalorder %s17_s13, %s85_s21  ;;  %p91_p5 = scmp.lt.s32.totalorder %s85_s21, %s85_s21 }
   0xb   :  { %p92_p6 = por %p91_p5, %p90_p4 }
   0xd   :  { %p93_p7 = pnand %p92_p6, %p86_p3 }
   0xf   :  { %96 = shalt.err (!%p93_p7)
}
  0x10   :  { %19 = dma.hbm_to_vmem [thread:$0]  %s175_s0, 128, %s17_s13, [#allocation3]  }
  0x11   :  { %119 = dma.done.wait [#allocation3], 128  }
  0x12   :  { %120 = vsyncadd [#allocation3], 4294967168  ;;  %v27_v0 = vld [vmem:[#allocation2] sm:$0xff]  ;;  %s124_s28 = smov [#allocation5]  }
  0x13   :  { %v67_v1 = vld [vmem:[%s176_s1] ss:$0 sm:$0xff]  ;;  %s57_s0 = sshll.u32 %s124_s28, 4  ;;  %s58_s0 = int_to_ptr.vmem [resolvable:$true] %s57_s0 }
  0x14   :  { %v66_v2 = vld [vmem:[%s177_s2] ss:$0 sm:$0xff]  ;;  %s97_s29 = scalar_lea.vmem %s58_s0, 128  ;;  %p102_p9 = scmp.lt.s32.totalorder %s58_s0, %s58_s0 }
  0x15   :  { %v36_v3 = vmul.f32 %v66_v2, %v27_v0  ;;  %p98_p8 = scmp.ne.s32.totalorder %s58_s0, %s97_s29  ;;  %p103_p10 = scmp.lt.s32.totalorder %s97_s29, %s97_s29 }
  0x17   :  { %v43_v4 = vsub.f32 %v67_v1, %v36_v3  ;;  %p104_p11 = por %p103_p10, %p102_p9 }
  0x19   :  { %v68_v5 = vmul.f32 -1.442695, %v43_v4  ;;  %p105_p12 = pnand %p104_p11, %p98_p8 }
  0x1b   :  { %71 = vpow2.f32 %v68_v5 }
  0x25   :  { %v72_v6 = vpop.eup %71 }
  0x26   :  { %v47_v7 = vadd.f32 1.0, %v72_v6 }
  0x28   :  { %73 = vrcp.f32 %v47_v7 }
  0x32   :  { %v74_v8 = vpop.eup %73 }
  0x33   :  { %50 = vst [vmem:[#allocation5] sm:$0xff] %v74_v8 }
  0x34   :  { %108 = shalt.err (!%p105_p12)
}
  0x35   :  { %s109_s30 = scalar_lea.hbm %s178_s3, 128 }
  0x36   :  { %p110_p13 = scmp.ne.s32.totalorder %s178_s3, %s109_s30  ;;  %p113_p0 = scmp.lt.u32.totalorder %s109_s30, %s178_s3 }
  0x38   :  { %p115_p1 = pnand %p113_p0, %p110_p13 }
  0x3a   :  { %118 = shalt.err (!%p115_p1)
}
  0x3b   :  { %60 = dma.vmem_to_hbm [thread:$0]  %s58_s0, 128, %s178_s3, [#allocation4]  }
  0x3c   :  { %121 = dma.done.wait [#allocation4], 128  }
  0x3d   :  { %122 = vsyncadd [#allocation4], 4294967168 }
  0x3e   :  { %64 = vsyncpa [#allocation3], 1 }
  0x3f   :  { %65 = vsyncpa [#allocation4], 1 }

</bundles_post_ra>
